<compile_context>
chip_gen: v5e
topology: v5e:2x2
jax: 0.10.0
libtpu: 0.0.40
codegen_flags: <defaults>
</compile_context>

<pallas_src>
import numpy as np
import jax
import jax.numpy as jnp
from jax.experimental import pallas as pl
from jax.experimental.pallas import tpu as pltpu


# ----------------------------------------------------------------------------
# Host-side helpers (weight matrices matching PyTorch BILINEAR, antialias=False).
# ----------------------------------------------------------------------------
def _bilinear_weight_matrix(out_size: int, in_size: int) -> np.ndarray:
    scale = in_size / out_size
    i = np.arange(out_size, dtype=np.float64)
    src = (i + 0.5) * scale - 0.5
    src = np.maximum(src, 0.0)                     # PyTorch clamps src >= 0
    i0 = np.floor(src).astype(np.int64)
    i0 = np.minimum(i0, in_size - 1)
    i1 = np.minimum(i0 + 1, in_size - 1)
    lam = np.clip(src - i0, 0.0, 1.0)
    R = np.zeros((out_size, in_size), dtype=np.float32)
    R[np.arange(out_size), i0] += (1.0 - lam).astype(np.float32)
    R[np.arange(out_size), i1] += lam.astype(np.float32)
    return R


def _resized_hw(h: int, w: int, size: int):
    # torchvision: resize the shorter side to `size`, preserve aspect ratio.
    short, long_ = (h, w) if h <= w else (w, h)
    if short == size:
        return h, w
    new_short = size
    new_long = int(size * long_ / short)
    return (new_short, new_long) if h <= w else (new_long, new_short)


def _source_band(R_cropped: np.ndarray):
    """[lo, hi) of source indices with nonzero weight in the cropped matrix."""
    nz = np.nonzero(np.any(R_cropped != 0.0, axis=0))[0]
    return int(nz.min()), int(nz.max()) + 1


def _aligned_window(lo: int, hi: int, dim: int, unit: int):
    """Smallest window [start, start+size) with size % unit == 0,
    start % size == 0, start+size <= dim, covering [lo, hi).
    Falls back to the full dimension."""
    need = hi - lo
    if need >= dim:
        return 0, dim
    size = -(-need // unit) * unit
    while size < dim:
        start = (lo // size) * size
        if start + size >= hi and start + size <= dim:
            return start, size
        size += unit
    return 0, dim


# ----------------------------------------------------------------------------
# Kernel factory.  One grid step == one image (all channels).
#   img block : (1, C*Hb, Wb) (flat) or (1, C, Hb, Wb), original dtype
#   rh        : (ch, Hb) bf16   cropped/banded row-interp matrix
#   rwt       : (Wb, cw) bf16   cropped/banded col-interp matrix (transposed)
#   scale,bias: (C,) f32 SMEM,  out = y * scale[c] + bias[c]
# ----------------------------------------------------------------------------
def _make_kernel(C, Hb, Wb, ch, cw, reduce_w_first, flat_input, out_dtype):
    fuse_second = (ch % 8) == 0  # sublane-aligned stacking of intermediates

    def kernel(img_ref, rh_ref, rwt_ref, scale_ref, bias_ref, out_ref):
        rh = rh_ref[...]          # (ch, Hb)  bf16
        rwt = rwt_ref[...]        # (Wb, cw)  bf16

        if reduce_w_first:
            if flat_input:
                xall = img_ref[0]                              # (C*Hb, Wb)
            else:
                # Hb is aligned to the input dtype's native sublane tile, so
                # this reshape is layout-free.
                xall = img_ref[0].reshape(C * Hb, Wb)
            xall = xall.astype(jnp.bfloat16)                   # direct u8/f32 -> bf16
            # Fused all-channel first matmul: (C*Hb, Wb) @ (Wb, cw).
            tall = jnp.dot(xall, rwt, preferred_element_type=jnp.float32)
            for c in range(C):                                 # C small, static unroll
                t = tall[c * Hb:(c + 1) * Hb].astype(jnp.bfloat16)          # (Hb, cw)
                y = jnp.dot(rh, t, preferred_element_type=jnp.float32)      # (ch, cw)
                out_ref[0, c] = (y * scale_ref[c] + bias_ref[c]).astype(out_dtype)
        else:
            x = img_ref[0]                                     # (C, Hb, Wb)
            ts = []
            for c in range(C):
                xc = x[c].astype(jnp.bfloat16)                 # (Hb, Wb)
                t = jnp.dot(rh, xc, preferred_element_type=jnp.float32)     # (ch, Wb)
                ts.append(t.astype(jnp.bfloat16))
            if fuse_second:
                # Single fused second matmul: (C*ch, Wb) @ (Wb, cw).
                tall = jnp.concatenate(ts, axis=0)
                yall = jnp.dot(tall, rwt, preferred_element_type=jnp.float32)
                for c in range(C):
                    y = yall[c * ch:(c + 1) * ch]
                    out_ref[0, c] = (y * scale_ref[c] + bias_ref[c]).astype(out_dtype)
            else:
                for c in range(C):
                    y = jnp.dot(ts[c], rwt, preferred_element_type=jnp.float32)
                    out_ref[0, c] = (y * scale_ref[c] + bias_ref[c]).astype(out_dtype)

    return kernel


# ----------------------------------------------------------------------------
# Wrapper: equivalent of torchvision ImageClassification.forward for NCHW input.
# ----------------------------------------------------------------------------
def image_classification_preprocess(
    img,
    *,
    crop_size: int,
    resize_size: int = 256,
    mean=(0.485, 0.456, 0.406),
    std=(0.229, 0.224, 0.225),
    out_dtype=jnp.float32,
):
    B, C, H, W = img.shape
    assert len(mean) == C and len(std) == C

    # convert_image_dtype: integer images are rescaled by 1/max; folded into the
    # per-channel affine epilogue so the raw integer image is DMA'd as-is.
    if jnp.issubdtype(img.dtype, jnp.integer):
        pixel_scale = 1.0 / float(jnp.iinfo(img.dtype).max)
    else:
        pixel_scale = 1.0

    new_h, new_w = _resized_hw(H, W, resize_size)
    Rh = _bilinear_weight_matrix(new_h, H)                 # (new_h, H)
    Rw = _bilinear_weight_matrix(new_w, W)                 # (new_w, W)

    ch = cw = crop_size
    # TODO(synk): torchvision pads when crop_size > resized size; not implemented.
    assert ch <= new_h and cw <= new_w, "crop larger than resized image"
    top = int(round((new_h - ch) / 2.0))
    left = int(round((new_w - cw) / 2.0))
    Rh_c = Rh[top:top + ch]                                # (ch, H)
    Rw_c = Rw[left:left + cw]                              # (cw, W)

    # Source band implied by the static center crop -> block-aligned window.
    h_lo, h_hi = _source_band(Rh_c)
    w_lo, w_hi = _source_band(Rw_c)
    itemsize = jnp.dtype(img.dtype).itemsize
    h_unit = max(8, 32 // itemsize)        # native sublane tile of the input dtype
    h_start, Hb = _aligned_window(h_lo, h_hi, H, h_unit)
    w_start, Wb = _aligned_window(w_lo, w_hi, W, 128)

    rh_band = jnp.asarray(Rh_c[:, h_start:h_start + Hb], dtype=jnp.bfloat16)     # (ch, Hb)
    rwt_band = jnp.asarray(Rw_c[:, w_start:w_start + Wb].T, dtype=jnp.bfloat16)  # (Wb, cw)

    std_np = np.asarray(std, np.float32)
    mean_np = np.asarray(mean, np.float32)
    scale = jnp.asarray(pixel_scale / std_np, jnp.float32)                       # (C,)
    bias = jnp.asarray(-mean_np / std_np, jnp.float32)                           # (C,)

    reduce_w_first = W >= H                   # reduce the larger spatial dim first
    flat_input = reduce_w_first and (h_start == 0 and Hb == H)

    kernel = _make_kernel(C, Hb, Wb, ch, cw, reduce_w_first, flat_input, out_dtype)

    if flat_input:
        img_spec = pl.BlockSpec((1, C * H, Wb), lambda b: (b, 0, w_start // Wb))
    else:
        img_spec = pl.BlockSpec((1, C, Hb, Wb),
                                lambda b: (b, 0, h_start // Hb, w_start // Wb))
    out_spec = pl.BlockSpec((1, C, ch, cw), lambda b: (b, 0, 0, 0))
    out_shape = jax.ShapeDtypeStruct((B, C, ch, cw), out_dtype)

    # VMEM budget: double-buffered in/out blocks + weights + matmul intermediates,
    # capped at ~87% of the physical VMEM of this TPU generation.
    out_itemsize = jnp.dtype(out_dtype).itemsize
    in_block = C * Hb * Wb * itemsize
    out_block = C * ch * cw * out_itemsize
    weight_bytes = (ch * Hb + Wb * cw) * 2
    inter_bytes = C * Hb * Wb * 2 + C * Hb * cw * 6 + C * ch * max(Wb, cw) * 6
    vmem_est = 2 * in_block + 2 * out_block + 2 * weight_bytes + inter_bytes
    try:
        vmem_cap = int(pltpu.get_tpu_info().vmem_capacity_bytes)
    except Exception:
        vmem_cap = 64 * 1024 * 1024            # conservative (v7x per-core size)
    vmem_limit = int(min(max(4 * vmem_est, 32 * 1024 * 1024), int(0.87 * vmem_cap)))

    cparams = pltpu.CompilerParams(
        dimension_semantics=("parallel",),
        vmem_limit_bytes=vmem_limit,
    )

    def run(single_buffer_weights):
        if single_buffer_weights:
            rh_spec = pl.BlockSpec((ch, Hb), lambda b: (0, 0),
                                   pipeline_mode=pl.Buffered(1))
            rwt_spec = pl.BlockSpec((Wb, cw), lambda b: (0, 0),
                                    pipeline_mode=pl.Buffered(1))
        else:
            rh_spec = pl.BlockSpec((ch, Hb), lambda b: (0, 0))
            rwt_spec = pl.BlockSpec((Wb, cw), lambda b: (0, 0))

        fn = pl.pallas_call(
            kernel,
            out_shape=out_shape,
            grid=(B,),
            in_specs=[
                img_spec,
                rh_spec,
                rwt_spec,
                pl.BlockSpec(memory_space=pltpu.MemorySpace.SMEM),
                pl.BlockSpec(memory_space=pltpu.MemorySpace.SMEM),
            ],
            out_specs=out_spec,
            compiler_params=cparams,
        )

        def call(x, rh, rwt, s, bvec):
            if flat_input:
                x = x.reshape(B, C * H, W)    # free bitcast under jit (contiguous NCHW)
            return fn(x, rh, rwt, s, bvec)

        out = jax.jit(call)(img, rh_band, rwt_band, scale, bias)
        return jax.block_until_ready(out)

    try:
        return run(True)
    except Exception:
        # pipeline_mode=pl.Buffered(1) not supported here -> default double buffering.
        return run(False)


# ----------------------------------------------------------------------------
# Pure-JAX f32 reference (same math, no Pallas / no bf16) for sanity checks.
# ----------------------------------------------------------------------------
def _reference(img, *, crop_size, resize_size, mean, std):
    B, C, H, W = img.shape
    if jnp.issubdtype(img.dtype, jnp.integer):
        x = img.astype(jnp.float32) / float(jnp.iinfo(img.dtype).max)
    else:
        x = img.astype(jnp.float32)
    new_h, new_w = _resized_hw(H, W, resize_size)
    Rh = jnp.asarray(_bilinear_weight_matrix(new_h, H))
    Rw = jnp.asarray(_bilinear_weight_matrix(new_w, W))
    y = jnp.einsum("oh,bchw,pw->bcop", Rh, x, Rw)
    top = int(round((new_h - crop_size) / 2.0))
    left = int(round((new_w - crop_size) / 2.0))
    y = y[:, :, top:top + crop_size, left:left + crop_size]
    m = jnp.asarray(mean, jnp.float32)[None, :, None, None]
    s = jnp.asarray(std, jnp.float32)[None, :, None, None]
    return (y - m) / s


if __name__ == "__main__":
    mean = (0.485, 0.456, 0.406)
    std = (0.229, 0.224, 0.225)
    key = jax.random.PRNGKey(0)
    k1, k2, k3 = jax.random.split(key, 3)

    def check(x, crop_size, resize_size, tag):
        out = image_classification_preprocess(
            x, crop_size=crop_size, resize_size=resize_size, mean=mean, std=std)
        out = jax.block_until_ready(out)
        ref = _reference(x, crop_size=crop_size, resize_size=resize_size,
                         mean=mean, std=std)
        assert out.shape == ref.shape
        ok = bool(jnp.allclose(out, ref, atol=7e-2, rtol=2e-2))
        assert ok, f"{tag}: max abs err {float(jnp.max(jnp.abs(out - ref)))}"

    # Case 1: uint8, wide image (W > H) -> reduce-W-first, wrapper-flattened fused path.
    x_u8 = jax.random.randint(k1, (2, 3, 16, 24), 0, 256, dtype=jnp.int32).astype(jnp.uint8)
    check(x_u8, crop_size=6, resize_size=8, tag="u8 wide")

    # Case 2: float32, tall image (H > W) -> reduce-H-first, fused second matmul.
    x_tall = jax.random.uniform(k2, (2, 3, 24, 16), dtype=jnp.float32)
    check(x_tall, crop_size=8, resize_size=12, tag="f32 tall")

    # Case 3: float32, wide image where the source-row band crop kicks in
    # (sub-window block + in-kernel reshape path).
    x_band = jax.random.uniform(k3, (2, 3, 64, 96), dtype=jnp.float32)
    check(x_band, crop_size=8, resize_size=16, tag="f32 band-crop")

    print("KERNEL_OK")
</pallas_src>

<mosaic_0001>
module attributes {stable_mosaic.version = 11 : i64} {
  func.func @kernel(%arg0: i32, %arg1: memref<1x48x24xi8, #tpu.memory_space<vmem>>, %arg2: memref<6x16xbf16, #tpu.memory_space<vmem>>, %arg3: memref<24x6xbf16, #tpu.memory_space<vmem>>, %arg4: memref<3xf32, #tpu.memory_space<smem>>, %arg5: memref<3xf32, #tpu.memory_space<smem>>, %arg6: memref<1x3x6x6xf32, #tpu.memory_space<vmem>>) attributes {dimension_semantics = [#tpu.dimension_semantics<parallel>], iteration_bounds = array<i64: 2>, scalar_prefetch = 0 : i64, scratch_operands = 0 : i64, tpu.core_type = #tpu.core_type<tc>, window_params = [{transform_indices = @transform_0, window_bounds = array<i64: 1, 48, 24>}, {pipeline_mode = #tpu.pipeline_mode<synchronous>, transform_indices = @transform_1, window_bounds = array<i64: 6, 16>}, {pipeline_mode = #tpu.pipeline_mode<synchronous>, transform_indices = @transform_2, window_bounds = array<i64: 24, 6>}, {transform_indices = @transform_3, window_bounds = array<i64: 3>}, {transform_indices = @transform_4, window_bounds = array<i64: 3>}, {transform_indices = @transform_5, window_bounds = array<i64: 1, 3, 6, 6>}]} {
    %c0 = arith.constant 0 : index
    %c0_0 = arith.constant 0 : index
    %0 = vector.load %arg2[%c0, %c0_0] : memref<6x16xbf16, #tpu.memory_space<vmem>>, vector<6x16xbf16>
    %c0_1 = arith.constant 0 : index
    %c0_2 = arith.constant 0 : index
    %1 = vector.load %arg3[%c0_1, %c0_2] : memref<24x6xbf16, #tpu.memory_space<vmem>>, vector<24x6xbf16>
    %c0_3 = arith.constant 0 : index
    %c0_4 = arith.constant 0 : index
    %c0_5 = arith.constant 0 : index
    %2 = vector.load %arg1[%c0_3, %c0_4, %c0_5] : memref<1x48x24xi8, #tpu.memory_space<vmem>>, vector<1x48x24xi8>
    %3 = vector.shape_cast %2 : vector<1x48x24xi8> to vector<48x24xi8>
    %4 = arith.uitofp %3 : vector<48x24xi8> to vector<48x24xbf16>
    %cst = arith.constant dense<0.000000e+00> : vector<48x6xf32>
    %5 = tpu.matmul %4, %1, %cst {dimension_numbers = #tpu.dot_dimension_numbers<[1], [0], [0], [1], [0, 0, 1, 1], [], []>} : vector<48x24xbf16>, vector<24x6xbf16>, vector<48x6xf32> -> vector<48x6xf32>
    %6 = vector.extract_strided_slice %5 {offsets = [0, 0], sizes = [16, 6], strides = [1, 1]} : vector<48x6xf32> to vector<16x6xf32>
    %7 = arith.truncf %6 : vector<16x6xf32> to vector<16x6xbf16>
    %cst_6 = arith.constant dense<0.000000e+00> : vector<6x6xf32>
    %8 = tpu.matmul %0, %7, %cst_6 {dimension_numbers = #tpu.dot_dimension_numbers<[1], [0], [0], [1], [0, 0, 1, 1], [], []>} : vector<6x16xbf16>, vector<16x6xbf16>, vector<6x6xf32> -> vector<6x6xf32>
    %c0_7 = arith.constant 0 : index
    %9 = memref.load %arg4[%c0_7] : memref<3xf32, #tpu.memory_space<smem>>
    %10 = vector.broadcast %9 : f32 to vector<6x6xf32>
    %11 = arith.mulf %8, %10 : vector<6x6xf32>
    %c0_8 = arith.constant 0 : index
    %12 = memref.load %arg5[%c0_8] : memref<3xf32, #tpu.memory_space<smem>>
    %13 = vector.broadcast %12 : f32 to vector<6x6xf32>
    %14 = arith.addf %11, %13 : vector<6x6xf32>
    %c0_9 = arith.constant 0 : index
    %c0_10 = arith.constant 0 : index
    %c0_11 = arith.constant 0 : index
    %c0_12 = arith.constant 0 : index
    %15 = vector.load %arg6[%c0_9, %c0_10, %c0_11, %c0_12] : memref<1x3x6x6xf32, #tpu.memory_space<vmem>>, vector<1x1x6x6xf32>
    %16 = vector.shape_cast %15 : vector<1x1x6x6xf32> to vector<6x6xf32>
    %17 = vector.shape_cast %14 : vector<6x6xf32> to vector<1x1x6x6xf32>
    tpu.vector_store %arg6[%c0_9, %c0_10, %c0_11, %c0_12], %17 {strides = array<i32>} : memref<1x3x6x6xf32, #tpu.memory_space<vmem>>, vector<1x1x6x6xf32>,
    %18 = vector.extract_strided_slice %5 {offsets = [16, 0], sizes = [16, 6], strides = [1, 1]} : vector<48x6xf32> to vector<16x6xf32>
    %19 = arith.truncf %18 : vector<16x6xf32> to vector<16x6xbf16>
    %cst_13 = arith.constant dense<0.000000e+00> : vector<6x6xf32>
    %20 = tpu.matmul %0, %19, %cst_13 {dimension_numbers = #tpu.dot_dimension_numbers<[1], [0], [0], [1], [0, 0, 1, 1], [], []>} : vector<6x16xbf16>, vector<16x6xbf16>, vector<6x6xf32> -> vector<6x6xf32>
    %c1 = arith.constant 1 : index
    %21 = memref.load %arg4[%c1] : memref<3xf32, #tpu.memory_space<smem>>
    %22 = vector.broadcast %21 : f32 to vector<6x6xf32>
    %23 = arith.mulf %20, %22 : vector<6x6xf32>
    %c1_14 = arith.constant 1 : index
    %24 = memref.load %arg5[%c1_14] : memref<3xf32, #tpu.memory_space<smem>>
    %25 = vector.broadcast %24 : f32 to vector<6x6xf32>
    %26 = arith.addf %23, %25 : vector<6x6xf32>
    %c0_15 = arith.constant 0 : index
    %c1_16 = arith.constant 1 : index
    %c0_17 = arith.constant 0 : index
    %c0_18 = arith.constant 0 : index
    %27 = vector.load %arg6[%c0_15, %c1_16, %c0_17, %c0_18] : memref<1x3x6x6xf32, #tpu.memory_space<vmem>>, vector<1x1x6x6xf32>
    %28 = vector.shape_cast %27 : vector<1x1x6x6xf32> to vector<6x6xf32>
    %29 = vector.shape_cast %26 : vector<6x6xf32> to vector<1x1x6x6xf32>
    tpu.vector_store %arg6[%c0_15, %c1_16, %c0_17, %c0_18], %29 {strides = array<i32>} : memref<1x3x6x6xf32, #tpu.memory_space<vmem>>, vector<1x1x6x6xf32>,
    %30 = vector.extract_strided_slice %5 {offsets = [32, 0], sizes = [16, 6], strides = [1, 1]} : vector<48x6xf32> to vector<16x6xf32>
    %31 = arith.truncf %30 : vector<16x6xf32> to vector<16x6xbf16>
    %cst_19 = arith.constant dense<0.000000e+00> : vector<6x6xf32>
    %32 = tpu.matmul %0, %31, %cst_19 {dimension_numbers = #tpu.dot_dimension_numbers<[1], [0], [0], [1], [0, 0, 1, 1], [], []>} : vector<6x16xbf16>, vector<16x6xbf16>, vector<6x6xf32> -> vector<6x6xf32>
    %c2 = arith.constant 2 : index
    %33 = memref.load %arg4[%c2] : memref<3xf32, #tpu.memory_space<smem>>
    %34 = vector.broadcast %33 : f32 to vector<6x6xf32>
    %35 = arith.mulf %32, %34 : vector<6x6xf32>
    %c2_20 = arith.constant 2 : index
    %36 = memref.load %arg5[%c2_20] : memref<3xf32, #tpu.memory_space<smem>>
    %37 = vector.broadcast %36 : f32 to vector<6x6xf32>
    %38 = arith.addf %35, %37 : vector<6x6xf32>
    %c0_21 = arith.constant 0 : index
    %c2_22 = arith.constant 2 : index
    %c0_23 = arith.constant 0 : index
    %c0_24 = arith.constant 0 : index
    %39 = vector.load %arg6[%c0_21, %c2_22, %c0_23, %c0_24] : memref<1x3x6x6xf32, #tpu.memory_space<vmem>>, vector<1x1x6x6xf32>
    %40 = vector.shape_cast %39 : vector<1x1x6x6xf32> to vector<6x6xf32>
    %41 = vector.shape_cast %38 : vector<6x6xf32> to vector<1x1x6x6xf32>
    tpu.vector_store %arg6[%c0_21, %c2_22, %c0_23, %c0_24], %41 {strides = array<i32>} : memref<1x3x6x6xf32, #tpu.memory_space<vmem>>, vector<1x1x6x6xf32>,
    return
  }
  func.func @transform_0(%arg0: i32) -> (i32, i32, i32) {
    %c0_i32 = arith.constant 0 : i32
    %c0_i32_0 = arith.constant 0 : i32
    %c0_i32_1 = arith.constant 0 : i32
    return %arg0, %c0_i32, %c0_i32_0 : i32, i32, i32
  }
  func.func @transform_1(%arg0: i32) -> (i32, i32) {
    %c0_i32 = arith.constant 0 : i32
    %c0_i32_0 = arith.constant 0 : i32
    %c0_i32_1 = arith.constant 0 : i32
    return %c0_i32, %c0_i32_0 : i32, i32
  }
  func.func @transform_2(%arg0: i32) -> (i32, i32) {
    %c0_i32 = arith.constant 0 : i32
    %c0_i32_0 = arith.constant 0 : i32
    %c0_i32_1 = arith.constant 0 : i32
    return %c0_i32, %c0_i32_0 : i32, i32
  }
  func.func @transform_3(%arg0: i32) -> i32 {
    %c0_i32 = arith.constant 0 : i32
    %c0_i32_0 = arith.constant 0 : i32
    return %c0_i32 : i32
  }
  func.func @transform_4(%arg0: i32) -> i32 {
    %c0_i32 = arith.constant 0 : i32
    %c0_i32_0 = arith.constant 0 : i32
    return %c0_i32 : i32
  }
  func.func @transform_5(%arg0: i32) -> (i32, i32, i32, i32) {
    %c0_i32 = arith.constant 0 : i32
    %c0_i32_0 = arith.constant 0 : i32
    %c0_i32_1 = arith.constant 0 : i32
    %c0_i32_2 = arith.constant 0 : i32
    return %arg0, %c0_i32, %c0_i32_0, %c0_i32_1 : i32, i32, i32, i32
  }
}

module attributes {stable_mosaic.version = 11 : i64} {
  func.func @kernel(%arg0: i32, %arg1: memref<1x48x24xi8, #tpu.memory_space<vmem>>, %arg2: memref<6x16xbf16, #tpu.memory_space<vmem>>, %arg3: memref<24x6xbf16, #tpu.memory_space<vmem>>, %arg4: memref<3xf32, #tpu.memory_space<smem>>, %arg5: memref<3xf32, #tpu.memory_space<smem>>, %arg6: memref<1x3x6x6xf32, #tpu.memory_space<vmem>>) attributes {dimension_semantics = [#tpu.dimension_semantics<parallel>], iteration_bounds = array<i64: 2>, scalar_prefetch = 0 : i64, scratch_operands = 0 : i64, tpu.core_type = #tpu.core_type<tc>, window_params = [{transform_indices = @transform_0, window_bounds = array<i64: 1, 48, 24>}, {pipeline_mode = #tpu.pipeline_mode<synchronous>, transform_indices = @transform_1, window_bounds = array<i64: 6, 16>}, {pipeline_mode = #tpu.pipeline_mode<synchronous>, transform_indices = @transform_2, window_bounds = array<i64: 24, 6>}, {transform_indices = @transform_3, window_bounds = array<i64: 3>}, {transform_indices = @transform_4, window_bounds = array<i64: 3>}, {transform_indices = @transform_5, window_bounds = array<i64: 1, 3, 6, 6>}]} {
    %c0 = arith.constant 0 : index
    %c0_0 = arith.constant 0 : index
    %0 = vector.load %arg2[%c0, %c0_0] : memref<6x16xbf16, #tpu.memory_space<vmem>>, vector<6x16xbf16>
    %c0_1 = arith.constant 0 : index
    %c0_2 = arith.constant 0 : index
    %1 = vector.load %arg3[%c0_1, %c0_2] : memref<24x6xbf16, #tpu.memory_space<vmem>>, vector<24x6xbf16>
    %c0_3 = arith.constant 0 : index
    %c0_4 = arith.constant 0 : index
    %c0_5 = arith.constant 0 : index
    %2 = vector.load %arg1[%c0_3, %c0_4, %c0_5] : memref<1x48x24xi8, #tpu.memory_space<vmem>>, vector<1x48x24xi8>
    %3 = vector.shape_cast %2 : vector<1x48x24xi8> to vector<48x24xi8>
    %4 = arith.uitofp %3 : vector<48x24xi8> to vector<48x24xbf16>
    %cst = arith.constant dense<0.000000e+00> : vector<48x6xf32>
    %5 = tpu.matmul %4, %1, %cst {dimension_numbers = #tpu.dot_dimension_numbers<[1], [0], [0], [1], [0, 0, 1, 1], [], []>} : vector<48x24xbf16>, vector<24x6xbf16>, vector<48x6xf32> -> vector<48x6xf32>
    %6 = vector.extract_strided_slice %5 {offsets = [0, 0], sizes = [16, 6], strides = [1, 1]} : vector<48x6xf32> to vector<16x6xf32>
    %7 = arith.truncf %6 : vector<16x6xf32> to vector<16x6xbf16>
    %cst_6 = arith.constant dense<0.000000e+00> : vector<6x6xf32>
    %8 = tpu.matmul %0, %7, %cst_6 {dimension_numbers = #tpu.dot_dimension_numbers<[1], [0], [0], [1], [0, 0, 1, 1], [], []>} : vector<6x16xbf16>, vector<16x6xbf16>, vector<6x6xf32> -> vector<6x6xf32>
    %c0_7 = arith.constant 0 : index
    %9 = memref.load %arg4[%c0_7] : memref<3xf32, #tpu.memory_space<smem>>
    %10 = vector.broadcast %9 : f32 to vector<6x6xf32>
    %11 = arith.mulf %8, %10 : vector<6x6xf32>
    %c0_8 = arith.constant 0 : index
    %12 = memref.load %arg5[%c0_8] : memref<3xf32, #tpu.memory_space<smem>>
    %13 = vector.broadcast %12 : f32 to vector<6x6xf32>
    %14 = arith.addf %11, %13 : vector<6x6xf32>
    %c0_9 = arith.constant 0 : index
    %c0_10 = arith.constant 0 : index
    %c0_11 = arith.constant 0 : index
    %c0_12 = arith.constant 0 : index
    %15 = vector.load %arg6[%c0_9, %c0_10, %c0_11, %c0_12] : memref<1x3x6x6xf32, #tpu.memory_space<vmem>>, vector<1x1x6x6xf32>
    %16 = vector.shape_cast %15 : vector<1x1x6x6xf32> to vector<6x6xf32>
    %17 = vector.shape_cast %14 : vector<6x6xf32> to vector<1x1x6x6xf32>
    tpu.vector_store %arg6[%c0_9, %c0_10, %c0_11, %c0_12], %17 {strides = array<i32>} : memref<1x3x6x6xf32, #tpu.memory_space<vmem>>, vector<1x1x6x6xf32>,
    %18 = vector.extract_strided_slice %5 {offsets = [16, 0], sizes = [16, 6], strides = [1, 1]} : vector<48x6xf32> to vector<16x6xf32>
    %19 = arith.truncf %18 : vector<16x6xf32> to vector<16x6xbf16>
    %cst_13 = arith.constant dense<0.000000e+00> : vector<6x6xf32>
    %20 = tpu.matmul %0, %19, %cst_13 {dimension_numbers = #tpu.dot_dimension_numbers<[1], [0], [0], [1], [0, 0, 1, 1], [], []>} : vector<6x16xbf16>, vector<16x6xbf16>, vector<6x6xf32> -> vector<6x6xf32>
    %c1 = arith.constant 1 : index
    %21 = memref.load %arg4[%c1] : memref<3xf32, #tpu.memory_space<smem>>
    %22 = vector.broadcast %21 : f32 to vector<6x6xf32>
    %23 = arith.mulf %20, %22 : vector<6x6xf32>
    %c1_14 = arith.constant 1 : index
    %24 = memref.load %arg5[%c1_14] : memref<3xf32, #tpu.memory_space<smem>>
    %25 = vector.broadcast %24 : f32 to vector<6x6xf32>
    %26 = arith.addf %23, %25 : vector<6x6xf32>
    %c0_15 = arith.constant 0 : index
    %c1_16 = arith.constant 1 : index
    %c0_17 = arith.constant 0 : index
    %c0_18 = arith.constant 0 : index
    %27 = vector.load %arg6[%c0_15, %c1_16, %c0_17, %c0_18] : memref<1x3x6x6xf32, #tpu.memory_space<vmem>>, vector<1x1x6x6xf32>
    %28 = vector.shape_cast %27 : vector<1x1x6x6xf32> to vector<6x6xf32>
    %29 = vector.shape_cast %26 : vector<6x6xf32> to vector<1x1x6x6xf32>
    tpu.vector_store %arg6[%c0_15, %c1_16, %c0_17, %c0_18], %29 {strides = array<i32>} : memref<1x3x6x6xf32, #tpu.memory_space<vmem>>, vector<1x1x6x6xf32>,
    %30 = vector.extract_strided_slice %5 {offsets = [32, 0], sizes = [16, 6], strides = [1, 1]} : vector<48x6xf32> to vector<16x6xf32>
    %31 = arith.truncf %30 : vector<16x6xf32> to vector<16x6xbf16>
    %cst_19 = arith.constant dense<0.000000e+00> : vector<6x6xf32>
    %32 = tpu.matmul %0, %31, %cst_19 {dimension_numbers = #tpu.dot_dimension_numbers<[1], [0], [0], [1], [0, 0, 1, 1], [], []>} : vector<6x16xbf16>, vector<16x6xbf16>, vector<6x6xf32> -> vector<6x6xf32>
    %c2 = arith.constant 2 : index
    %33 = memref.load %arg4[%c2] : memref<3xf32, #tpu.memory_space<smem>>
    %34 = vector.broadcast %33 : f32 to vector<6x6xf32>
    %35 = arith.mulf %32, %34 : vector<6x6xf32>
    %c2_20 = arith.constant 2 : index
    %36 = memref.load %arg5[%c2_20] : memref<3xf32, #tpu.memory_space<smem>>
    %37 = vector.broadcast %36 : f32 to vector<6x6xf32>
    %38 = arith.addf %35, %37 : vector<6x6xf32>
    %c0_21 = arith.constant 0 : index
    %c2_22 = arith.constant 2 : index
    %c0_23 = arith.constant 0 : index
    %c0_24 = arith.constant 0 : index
    %39 = vector.load %arg6[%c0_21, %c2_22, %c0_23, %c0_24] : memref<1x3x6x6xf32, #tpu.memory_space<vmem>>, vector<1x1x6x6xf32>
    %40 = vector.shape_cast %39 : vector<1x1x6x6xf32> to vector<6x6xf32>
    %41 = vector.shape_cast %38 : vector<6x6xf32> to vector<1x1x6x6xf32>
    tpu.vector_store %arg6[%c0_21, %c2_22, %c0_23, %c0_24], %41 {strides = array<i32>} : memref<1x3x6x6xf32, #tpu.memory_space<vmem>>, vector<1x1x6x6xf32>,
    return
  }
  func.func @transform_0(%arg0: i32) -> (i32, i32, i32) {
    %c0_i32 = arith.constant 0 : i32
    %c0_i32_0 = arith.constant 0 : i32
    %c0_i32_1 = arith.constant 0 : i32
    return %arg0, %c0_i32, %c0_i32_0 : i32, i32, i32
  }
  func.func @transform_1(%arg0: i32) -> (i32, i32) {
    %c0_i32 = arith.constant 0 : i32
    %c0_i32_0 = arith.constant 0 : i32
    %c0_i32_1 = arith.constant 0 : i32
    return %c0_i32, %c0_i32_0 : i32, i32
  }
  func.func @transform_2(%arg0: i32) -> (i32, i32) {
    %c0_i32 = arith.constant 0 : i32
    %c0_i32_0 = arith.constant 0 : i32
    %c0_i32_1 = arith.constant 0 : i32
    return %c0_i32, %c0_i32_0 : i32, i32
  }
  func.func @transform_3(%arg0: i32) -> i32 {
    %c0_i32 = arith.constant 0 : i32
    %c0_i32_0 = arith.constant 0 : i32
    return %c0_i32 : i32
  }
  func.func @transform_4(%arg0: i32) -> i32 {
    %c0_i32 = arith.constant 0 : i32
    %c0_i32_0 = arith.constant 0 : i32
    return %c0_i32 : i32
  }
  func.func @transform_5(%arg0: i32) -> (i32, i32, i32, i32) {
    %c0_i32 = arith.constant 0 : i32
    %c0_i32_0 = arith.constant 0 : i32
    %c0_i32_1 = arith.constant 0 : i32
    %c0_i32_2 = arith.constant 0 : i32
    return %arg0, %c0_i32, %c0_i32_0, %c0_i32_1 : i32, i32, i32, i32
  }
}

</mosaic_0001>

<bundles_post_ra>
// kernel: call.1
= control target key start
LH: loop header
LB: loop body
LE: loop exit
PB: predicated region body
PF: predicated region fallthrough
CT: control target
= control target key end

     0   :  { %10 = vsyncpa [#allocation3], 0  ;;  %s889_s0 = inlined_call_operand.hbm [shape: u8[2,48,24], index: 0, kind: input, shape index: {}]   ;;  %s890_s1 = inlined_call_operand.vmem [shape: bf16[6,16], index: 1, kind: input, shape index: {}]   ;;  %s891_s2 = inlined_call_operand.vmem [shape: bf16[24,6], index: 2, kind: input, shape index: {}]   ;;  %s892_s3 = inlined_call_operand.vmem [shape: f32[3], index: 3, kind: input, shape index: {}]   ;;  %s893_s4 = inlined_call_operand.vmem [shape: f32[3], index: 4, kind: input, shape index: {}]   ;;  %s894_s5 = inlined_call_operand.vmem [shape: f32[2,3,6,6], index: 5, kind: output, shape index: {}]  }
   0x1   :  { %12 = vsyncpa [#allocation3 + $0x1], 0 }
   0x2   :  { %13 = vsyncpa [#allocation4], 0 }
   0x3   :  { %14 = vsyncpa [#allocation7], 0  ;;  %s761_s18 = smov 0   ;;  %s763_s19 = smov 0  }
   0x4   :  { %s765_s20 = smov 0   ;;  %s767_s21 = smov 0  }
   0x5 LB: > { %s780_s22 = sadd.s32 4294967295, %s725_s21   ;;  %s783_s23 = sadd.s32 1, %s725_s21   ;;  %s725_s21 = sphi %s767_s21, %s902_s21   ;;  %s721_s20 = sphi %s765_s20, %s901_s20   ;;  %s717_s19 = sphi %s763_s19, %s900_s19   ;;  %s713_s18 = sphi %s761_s18, %s899_s18  }
   0x6   : > { %s24_s24 = ssub.s32 %s725_s21, %s783_s23  ;;  %s27_s25 = sadd.s32 1, %s721_s20 }
   0x7   : > { %p25_p0 = scmp.eq.s32.totalorder %s24_s24, 0  ;;  %p34_p1 = scmp.ne.s32.totalorder %s721_s20, %s717_s19 }
   0x8   : > { %p35_p2 = scmp.eq.s32.totalorder %s725_s21, 0  ;;  %p40_p3 = scmp.ne.s32.totalorder %s717_s19, %s713_s18 }
   0x9   : > { %s793_s26 = scalar_select %p25_p0, %s721_s20, %s27_s25  }
   0xa   : > { %p795_p4 = por %p35_p2, %p34_p1  ;;  %p41_p5 = scmp.eq.s32.totalorder %s780_s22, 0 }
   0xb   : > { %p513_p6 = scmp.ge.s32.totalorder %s725_s21, 1  ;;  %p161_p7 = scmp.lt.s32.totalorder %s725_s21, 3 }
   0xc   : > { %p804_p8 = por %p41_p5, %p40_p3  ;;  %s179_s7 = sshll.u32 %s892_s3, 4  ;;  %s180_s7 = int_to_ptr.vmem [resolvable:$true] %s179_s7 }
   0xd   : > { %p808_p9 = pnand %p513_p6, %p161_p7  ;;  %p584_p11 = scmp.lt.s32.totalorder %s725_s21, 2 }
   0xe   : > { %s189_s10 = sshll.u32 %s893_s4, 4  ;;  %s200_s12 = sand.u32 1, %s721_s20   ;;  %s190_s10 = int_to_ptr.vmem [resolvable:$true] %s189_s10 }
   0xf   : > { %p571_p10 = pneg %p808_p9  ;;  %p825_p13 = pnand %p584_p11, %p795_p4 }
  0x10   : > { %s727_s13 = smov [#allocation5]   ;;  %s728_s14 = smov [#allocation6]  }
  0x11   : > { %p572_p12 = pnand %p571_p10, %p41_p5  ;;  %s557_s15 = smul.u32 12, %s200_s12 }
  0x12   : > { %s558_s16 = smul.u32 12, %s725_s21  ;;  %s201_s27 = scalar_lea.sflag [#allocation3], %s200_s12 }
  0x13   : > { %574 = dma.vmem_to_smem (!%p572_p12), %s180_s7, 16, %s727_s13, [#allocation4]  }
  0x14   : > { %577 = dma.vmem_to_smem (!%p572_p12), %s190_s10, 16, %s728_s14, [#allocation7]  }
  0x15   : > { %s209_s24 = scalar_lea.hbm %s889_s0, %s558_s16  ;;  %s204_s25 = scalar_lea.vmem [#allocation2], %s557_s15 }
  0x16   : > { %s212_s30 = sshll.u32 %s204_s25, 4  ;;  %s210_s6 = sshll.u32 %s209_s24, 4  ;;  %s213_s30 = int_to_ptr.vmem [resolvable:$true] %s212_s30  ;;  %s211_s6 = int_to_ptr.hbm [resolvable:$true] %s210_s6 }
  0x17   : > { %s653_s8 = sshra.s32 %s211_s6, 4  ;;  %p657_p1 = pneg %p825_p13  ;;  %s654_s8 = int_to_ptr.hbm [resolvable:$true] %s653_s8 }
  0x18   : > { %s655_s9 = scalar_lea.hbm %s654_s8, 12  ;;  %s660_s10 = scalar_lea.hbm %s889_s0, 24 }
  0x19   : > { %p656_p0 = scmp.ne.s32.totalorder %s654_s8, %s655_s9  ;;  %p661_p4 = scmp.lt.s32.totalorder %s654_s8, %s889_s0 }
  0x1a   : > { %p662_p6 = scmp.lt.s32.totalorder %s660_s10, %s655_s9 }
  0x1b   : > { %p658_p2 = pnand %p657_p1, %p656_p0 }
  0x1c   : > { %p663_p7 = por %p662_p6, %p661_p4 }
  0x1d   : > { %p659_p3 = pneg %p658_p2 }
  0x1f   : > { %p664_p10 = pnand %p663_p7, %p659_p3 }
  0x21   : > { %667 = shalt.err (!%p664_p10)
}
  0x22   : > { %s729_s12 = smov 32   ;;  %s730_s15 = smov 2  }
  0x23   : > { %581 = dma.hbm_to_vmem [thread:$0]  (!%p825_p13), %s211_s6, 192, %s213_s30, %s201_s27, %s729_s12, %s729_s12, %s730_s15  }
  0x24   : > { %224 = sbr.rel (%p808_p9) target bundleno = 356 (0x164), region = 40  ;;  %s226_s16 = sand.u32 (!%p808_p9), 1, %s717_s19  }
  0x25   : > { %s559_s17 = smul.u32 (!%p808_p9), 12, %s226_s16  ;;  %s227_s18 = scalar_lea.sflag (!%p808_p9), [#allocation3], %s226_s16 }
  0x27   : > { %s230_s24 = scalar_lea.vmem (!%p808_p9), [#allocation2], %s559_s17 }
  0x29   : > { %700 = dma.done.wait (%p804_p8), %s227_s18, 192  }
  0x2a   : > { %702 = vsyncadd (%p804_p8), %s227_s18, 4294967104 }
  0x2b   : > { %704 = dma.done.wait (%p41_p5), [#allocation4], 16  }
  0x2c   : > { %706 = vsyncadd (%p41_p5), [#allocation4], 4294967280 }
  0x2d   : > { %708 = dma.done.wait (%p41_p5), [#allocation7], 16  }
  0x2e   : > { %710 = vsyncadd (%p41_p5), [#allocation7], 4294967280 }
  0x2f   : > { %246 = sfence }
  0x30   : > { %v278_v0 = vld [vmem:[%s891_s2 + $0x8] sm:$0xf]  ;;  %v542_v1 = vld [vmem:[%s230_s24] sm:$0xff]   ;;  %vm325_vm0 = vcmask 1043456   ;;  %vm315_vm1 = vcmask 195584   ;;  %vm354_vm2 = vcmask 130048  }
  0x31   : > { %v311_v2 = vunpack.c.l.b16 %v278_v0  ;;  %v543_v3 = vunpack.c.0.s8 %v542_v1  ;;  %v544_v4 = vunpack.c.1.s8 %v542_v1  ;;  %v556_v5 = vld [vmem:[%s230_s24 + $0x8] sm:$0xf]   ;;  %v540_v16 = vld [vmem:[%s891_s2] sm:$0xff]  ;;  %v547_v21 = vunpack.c.2.s8 %v542_v1  ;;  %p269_p5 = scmp.lt.s32.totalorder %s780_s22, 1  ;;  %s371_s27 = sld [smem:[#allocation5]] }
  0x32   : > { %v551_v6 = vunpack.c.0.s8 %v556_v5  ;;  %v552_v7 = vunpack.c.1.s8 %v556_v5  ;;  %v548_v22 = vunpack.c.3.s8 %v542_v1  ;;  %v275_v34 = vld [vmem:[%s890_s1] sm:$0x7]  ;;  %s374_s8 = sld [smem:[#allocation6]]  ;;  %vm377_vm3 = vcmask 46080  }
  0x33   : > { %v313_v8 = vpack.c.b16 %v311_v2, %v311_v2  ;;  %v291_v9 = vand.u32 255, %v543_v3  ;;  %v292_v10 = vand.u32 255, %v544_v4  ;;  %v293_v23 = vand.u32 255, %v547_v21  ;;  %s904_s22 = smov (!%p269_p5, %s780_s22), 1  ;;  %s535_s9 = sld [smem:[#allocation5 + $0x2]] }
  0x34   : > { %v295_v11 = vand.u32 255, %v551_v6  ;;  %v296_v12 = vand.u32 255, %v552_v7  ;;  %v294_v24 = vand.u32 255, %v548_v22  ;;  %s560_s7 = smul.u32 24, %s904_s22  ;;  %s536_s21 = sld [smem:[#allocation6 + $0x2]] }
  0x35   : > { %v327_v13 = vsel %vm325_vm0, %v313_v8, 0  ;;  %v297_v14 = vcvt.s32.f32 %v291_v9  ;;  %v298_v15 = vcvt.s32.f32 %v292_v10  ;;  %v299_v25 = vcvt.s32.f32 %v293_v23  ;;  %s531_s22 = sld [smem:[#allocation5 + $0x1]] }
  0x36   : > { %335 = vmatpush.bf16.msra.mxu0 %v327_v13  ;;  %553 = vmatpush.bf16.msra.mxu1 %v327_v13  ;;  %v301_v17 = vcvt.s32.f32 %v295_v11  ;;  %v302_v18 = vcvt.s32.f32 %v296_v12  ;;  %v300_v26 = vcvt.s32.f32 %v294_v24  ;;  %s273_s14 = scalar_lea.vmem %s894_s5, %s560_s7  ;;  %s532_s12 = sld [smem:[#allocation6 + $0x1]] }
  0x37   : > { %v303_v19 = vpack.c.bf16 %v298_v15, %v297_v14  ;;  %v372_v38 = vstv %s371_s27 }
  0x38   : > { %v305_v20 = vpack.c.bf16 %v302_v18, %v301_v17  ;;  %v304_v27 = vpack.c.bf16 %v300_v26, %v299_v25  ;;  %v375_v40 = vstv %s374_s8 }
  0x39   : > { %v416_v43 = vstv %s535_s9 }
  0x3a   : > { %336 = vmatpush.bf16.msra.mxu0 %v540_v16  ;;  %554 = vmatpush.bf16.msra.mxu1 %v540_v16  ;;  %v419_v45 = vstv %s536_s21 }
  0x3b   : > { %v394_v50 = vstv %s531_s22 }
  0x3c   : > { %v397_v52 = vstv %s532_s12 }
  0x3d   : > { %526 = vmatmul.msk.bf16.vlgmr.msra.gmra.mxu0 %vm315_vm1, %v303_v19  ;;  %528 = vmatmul.msk.bf16.vlgmr.msra.gmra.mxu1 %vm315_vm1, %v305_v20 }
  0x4d   : > { %527 = vmatmul.msk.bf16.gmra.mxu0 %vm315_vm1, %v304_v27 }
  0xba   : > { %v338_v28 = vpop.f32.mrf.mxu0  ;;  %v348_v29 = vpop.f32.mrf.mxu1 }
  0xc2   : > { %v340_v30 = vpop.f32.mrf.mxu0  ;;  %v350_v31 = vpop.f32.mrf.mxu1 }
  0xc3   : > { %v353_v32 = vpack.c.bf16 %v340_v30, %v338_v28  ;;  %v401_v33 = vpack.c.bf16 %v350_v31, %v348_v29 }
  0xc5   : > { %365 = vmatpush.bf16.msrb.mxu1 %v353_v32  ;;  %409 = vmatpush.bf16.msra.mxu3 %v401_v33 }
  0xc8   : > { %534 = vmatmul.msk.bf16.vlgmr.msra.gmra.mxu3 %vm354_vm2, %v275_v34  ;;  %529 = vmatmul.msk.bf16.vlgmr.msrb.gmra.mxu1 %vm354_vm2, %v275_v34 }
  0xca   : > { %v343_v35 = vpop.f32.mrf.mxu0 }
  0xd2   : > { %v345_v36 = vpop.f32.mrf.mxu0 }
  0xd3   : > { %v379_v37 = vpack.c.bf16 %v345_v36, %v343_v35 }
  0xd5   : > { %387 = vmatpush.bf16.msra.mxu2 %v379_v37 }
  0xd8   : > { %530 = vmatmul.msk.bf16.vlgmr.msra.gmra.mxu2 %vm354_vm2, %v275_v34 }
 0x145   : > { %v367_v39 = vpop.f32.mrf.mxu1 }
 0x146   : > { %v373_v41 = vmul.f32 %v372_v38, %v367_v39 }
 0x148   : > { %v376_v42 = vadd.f32 %v375_v40, %v373_v41 }
 0x14a   : > { %378 = vst.msk [vmem:[%s273_s14] sm:$0x3f] %vm377_vm3, %v376_v42 }
 0x14b   : > { %v411_v44 = vpop.f32.mrf.mxu3 }
 0x14c   : > { %v417_v46 = vmul.f32 %v416_v43, %v411_v44 }
 0x14d   : > { %v369_v47 = vpop.f32.mrf.mxu1 }
 0x14e   : > { %v420_v48 = vadd.f32 %v419_v45, %v417_v46 }
 0x150   : > { %537 = vst.msk [vmem:[%s273_s14 + $0x10] sm:$0x3f] %vm377_vm3, %v420_v48 }
 0x153   : > { %v413_v49 = vpop.f32.mrf.mxu3 }
 0x15b   : > { %v389_v51 = vpop.f32.mrf.mxu2 }
 0x15c   : > { %v395_v53 = vmul.f32 %v394_v50, %v389_v51 }
 0x15e   : > { %v398_v54 = vadd.f32 %v397_v52, %v395_v53 }
 0x160   : > { %533 = vst.msk [vmem:[%s273_s14 + $0x8] sm:$0x3f] %vm377_vm3, %v398_v54 }
 0x163   : > { %v391_v55 = vpop.f32.mrf.mxu2 }
 0x164 PF: > { %p17_p8 = scmp.ge.s32.totalorder %s783_s23, 4   ;;  %s899_s18 = smov %s717_s19 }
 0x165   : > { %s900_s19 = smov %s721_s20  ;;  %s901_s20 = smov %s793_s26 }
 0x166   : > { %s902_s21 = smov %s783_s23  ;;  %19 = sbr.rel (!%p17_p8) target bundleno = 5 (0x5), region = 91 }
 0x16b   :  { %444 = vsyncpa [#allocation3], 1 }
 0x16c   :  { %446 = vsyncpa [#allocation3 + $0x1], 1 }
 0x16d   :  { %447 = vsyncpa [#allocation4], 1 }
 0x16e   :  { %449 = vsyncpa [#allocation4 + $0x1], 1 }
 0x16f   :  { %450 = vsyncpa [#allocation7], 1 }

// kernel: call.1
= control target key start
LH: loop header
LB: loop body
LE: loop exit
PB: predicated region body
PF: predicated region fallthrough
CT: control target
= control target key end

     0   :  { %10 = vsyncpa [#allocation3], 0  ;;  %s889_s0 = inlined_call_operand.hbm [shape: u8[2,48,24], index: 0, kind: input, shape index: {}]   ;;  %s890_s1 = inlined_call_operand.vmem [shape: bf16[6,16], index: 1, kind: input, shape index: {}]   ;;  %s891_s2 = inlined_call_operand.vmem [shape: bf16[24,6], index: 2, kind: input, shape index: {}]   ;;  %s892_s3 = inlined_call_operand.vmem [shape: f32[3], index: 3, kind: input, shape index: {}]   ;;  %s893_s4 = inlined_call_operand.vmem [shape: f32[3], index: 4, kind: input, shape index: {}]   ;;  %s894_s5 = inlined_call_operand.vmem [shape: f32[2,3,6,6], index: 5, kind: output, shape index: {}]  }
   0x1   :  { %12 = vsyncpa [#allocation3 + $0x1], 0 }
   0x2   :  { %13 = vsyncpa [#allocation4], 0 }
   0x3   :  { %14 = vsyncpa [#allocation7], 0  ;;  %s761_s18 = smov 0   ;;  %s763_s19 = smov 0  }
   0x4   :  { %s765_s20 = smov 0   ;;  %s767_s21 = smov 0  }
   0x5 LB: > { %s780_s22 = sadd.s32 4294967295, %s725_s21   ;;  %s783_s23 = sadd.s32 1, %s725_s21   ;;  %s725_s21 = sphi %s767_s21, %s902_s21   ;;  %s721_s20 = sphi %s765_s20, %s901_s20   ;;  %s717_s19 = sphi %s763_s19, %s900_s19   ;;  %s713_s18 = sphi %s761_s18, %s899_s18  }
   0x6   : > { %s24_s24 = ssub.s32 %s725_s21, %s783_s23  ;;  %s27_s25 = sadd.s32 1, %s721_s20 }
   0x7   : > { %p25_p0 = scmp.eq.s32.totalorder %s24_s24, 0  ;;  %p34_p1 = scmp.ne.s32.totalorder %s721_s20, %s717_s19 }
   0x8   : > { %p35_p2 = scmp.eq.s32.totalorder %s725_s21, 0  ;;  %p40_p3 = scmp.ne.s32.totalorder %s717_s19, %s713_s18 }
   0x9   : > { %s793_s26 = scalar_select %p25_p0, %s721_s20, %s27_s25  }
   0xa   : > { %p795_p4 = por %p35_p2, %p34_p1  ;;  %p41_p5 = scmp.eq.s32.totalorder %s780_s22, 0 }
   0xb   : > { %p513_p6 = scmp.ge.s32.totalorder %s725_s21, 1  ;;  %p161_p7 = scmp.lt.s32.totalorder %s725_s21, 3 }
   0xc   : > { %p804_p8 = por %p41_p5, %p40_p3  ;;  %s179_s7 = sshll.u32 %s892_s3, 4  ;;  %s180_s7 = int_to_ptr.vmem [resolvable:$true] %s179_s7 }
   0xd   : > { %p808_p9 = pnand %p513_p6, %p161_p7  ;;  %p584_p11 = scmp.lt.s32.totalorder %s725_s21, 2 }
   0xe   : > { %s189_s10 = sshll.u32 %s893_s4, 4  ;;  %s200_s12 = sand.u32 1, %s721_s20   ;;  %s190_s10 = int_to_ptr.vmem [resolvable:$true] %s189_s10 }
   0xf   : > { %p571_p10 = pneg %p808_p9  ;;  %p825_p13 = pnand %p584_p11, %p795_p4 }
  0x10   : > { %s727_s13 = smov [#allocation5]   ;;  %s728_s14 = smov [#allocation6]  }
  0x11   : > { %p572_p12 = pnand %p571_p10, %p41_p5  ;;  %s557_s15 = smul.u32 12, %s200_s12 }
  0x12   : > { %s558_s16 = smul.u32 12, %s725_s21  ;;  %s201_s27 = scalar_lea.sflag [#allocation3], %s200_s12 }
  0x13   : > { %574 = dma.vmem_to_smem (!%p572_p12), %s180_s7, 16, %s727_s13, [#allocation4]  }
  0x14   : > { %577 = dma.vmem_to_smem (!%p572_p12), %s190_s10, 16, %s728_s14, [#allocation7]  }
  0x15   : > { %s209_s24 = scalar_lea.hbm %s889_s0, %s558_s16  ;;  %s204_s25 = scalar_lea.vmem [#allocation2], %s557_s15 }
  0x16   : > { %s212_s30 = sshll.u32 %s204_s25, 4  ;;  %s210_s6 = sshll.u32 %s209_s24, 4  ;;  %s213_s30 = int_to_ptr.vmem [resolvable:$true] %s212_s30  ;;  %s211_s6 = int_to_ptr.hbm [resolvable:$true] %s210_s6 }
  0x17   : > { %s653_s8 = sshra.s32 %s211_s6, 4  ;;  %p657_p1 = pneg %p825_p13  ;;  %s654_s8 = int_to_ptr.hbm [resolvable:$true] %s653_s8 }
  0x18   : > { %s655_s9 = scalar_lea.hbm %s654_s8, 12  ;;  %s660_s10 = scalar_lea.hbm %s889_s0, 24 }
  0x19   : > { %p656_p0 = scmp.ne.s32.totalorder %s654_s8, %s655_s9  ;;  %p661_p4 = scmp.lt.s32.totalorder %s654_s8, %s889_s0 }
  0x1a   : > { %p662_p6 = scmp.lt.s32.totalorder %s660_s10, %s655_s9 }
  0x1b   : > { %p658_p2 = pnand %p657_p1, %p656_p0 }
  0x1c   : > { %p663_p7 = por %p662_p6, %p661_p4 }
  0x1d   : > { %p659_p3 = pneg %p658_p2 }
  0x1f   : > { %p664_p10 = pnand %p663_p7, %p659_p3 }
  0x21   : > { %667 = shalt.err (!%p664_p10)
}
  0x22   : > { %s729_s12 = smov 32   ;;  %s730_s15 = smov 2  }
  0x23   : > { %581 = dma.hbm_to_vmem [thread:$0]  (!%p825_p13), %s211_s6, 192, %s213_s30, %s201_s27, %s729_s12, %s729_s12, %s730_s15  }
  0x24   : > { %224 = sbr.rel (%p808_p9) target bundleno = 356 (0x164), region = 40  ;;  %s226_s16 = sand.u32 (!%p808_p9), 1, %s717_s19  }
  0x25   : > { %s559_s17 = smul.u32 (!%p808_p9), 12, %s226_s16  ;;  %s227_s18 = scalar_lea.sflag (!%p808_p9), [#allocation3], %s226_s16 }
  0x27   : > { %s230_s24 = scalar_lea.vmem (!%p808_p9), [#allocation2], %s559_s17 }
  0x29   : > { %700 = dma.done.wait (%p804_p8), %s227_s18, 192  }
  0x2a   : > { %702 = vsyncadd (%p804_p8), %s227_s18, 4294967104 }
  0x2b   : > { %704 = dma.done.wait (%p41_p5), [#allocation4], 16  }
  0x2c   : > { %706 = vsyncadd (%p41_p5), [#allocation4], 4294967280 }
  0x2d   : > { %708 = dma.done.wait (%p41_p5), [#allocation7], 16  }
  0x2e   : > { %710 = vsyncadd (%p41_p5), [#allocation7], 4294967280 }
  0x2f   : > { %246 = sfence }
  0x30   : > { %v278_v0 = vld [vmem:[%s891_s2 + $0x8] sm:$0xf]  ;;  %v542_v1 = vld [vmem:[%s230_s24] sm:$0xff]   ;;  %vm325_vm0 = vcmask 1043456   ;;  %vm315_vm1 = vcmask 195584   ;;  %vm354_vm2 = vcmask 130048  }
  0x31   : > { %v311_v2 = vunpack.c.l.b16 %v278_v0  ;;  %v543_v3 = vunpack.c.0.s8 %v542_v1  ;;  %v544_v4 = vunpack.c.1.s8 %v542_v1  ;;  %v556_v5 = vld [vmem:[%s230_s24 + $0x8] sm:$0xf]   ;;  %v540_v16 = vld [vmem:[%s891_s2] sm:$0xff]  ;;  %v547_v21 = vunpack.c.2.s8 %v542_v1  ;;  %p269_p5 = scmp.lt.s32.totalorder %s780_s22, 1  ;;  %s371_s27 = sld [smem:[#allocation5]] }
  0x32   : > { %v551_v6 = vunpack.c.0.s8 %v556_v5  ;;  %v552_v7 = vunpack.c.1.s8 %v556_v5  ;;  %v548_v22 = vunpack.c.3.s8 %v542_v1  ;;  %v275_v34 = vld [vmem:[%s890_s1] sm:$0x7]  ;;  %s374_s8 = sld [smem:[#allocation6]]  ;;  %vm377_vm3 = vcmask 46080  }
  0x33   : > { %v313_v8 = vpack.c.b16 %v311_v2, %v311_v2  ;;  %v291_v9 = vand.u32 255, %v543_v3  ;;  %v292_v10 = vand.u32 255, %v544_v4  ;;  %v293_v23 = vand.u32 255, %v547_v21  ;;  %s904_s22 = smov (!%p269_p5, %s780_s22), 1  ;;  %s535_s9 = sld [smem:[#allocation5 + $0x2]] }
  0x34   : > { %v295_v11 = vand.u32 255, %v551_v6  ;;  %v296_v12 = vand.u32 255, %v552_v7  ;;  %v294_v24 = vand.u32 255, %v548_v22  ;;  %s560_s7 = smul.u32 24, %s904_s22  ;;  %s536_s21 = sld [smem:[#allocation6 + $0x2]] }
  0x35   : > { %v327_v13 = vsel %vm325_vm0, %v313_v8, 0  ;;  %v297_v14 = vcvt.s32.f32 %v291_v9  ;;  %v298_v15 = vcvt.s32.f32 %v292_v10  ;;  %v299_v25 = vcvt.s32.f32 %v293_v23  ;;  %s531_s22 = sld [smem:[#allocation5 + $0x1]] }
  0x36   : > { %335 = vmatpush.bf16.msra.mxu0 %v327_v13  ;;  %553 = vmatpush.bf16.msra.mxu1 %v327_v13  ;;  %v301_v17 = vcvt.s32.f32 %v295_v11  ;;  %v302_v18 = vcvt.s32.f32 %v296_v12  ;;  %v300_v26 = vcvt.s32.f32 %v294_v24  ;;  %s273_s14 = scalar_lea.vmem %s894_s5, %s560_s7  ;;  %s532_s12 = sld [smem:[#allocation6 + $0x1]] }
  0x37   : > { %v303_v19 = vpack.c.bf16 %v298_v15, %v297_v14  ;;  %v372_v38 = vstv %s371_s27 }
  0x38   : > { %v305_v20 = vpack.c.bf16 %v302_v18, %v301_v17  ;;  %v304_v27 = vpack.c.bf16 %v300_v26, %v299_v25  ;;  %v375_v40 = vstv %s374_s8 }
  0x39   : > { %v416_v43 = vstv %s535_s9 }
  0x3a   : > { %336 = vmatpush.bf16.msra.mxu0 %v540_v16  ;;  %554 = vmatpush.bf16.msra.mxu1 %v540_v16  ;;  %v419_v45 = vstv %s536_s21 }
  0x3b   : > { %v394_v50 = vstv %s531_s22 }
  0x3c   : > { %v397_v52 = vstv %s532_s12 }
  0x3d   : > { %526 = vmatmul.msk.bf16.vlgmr.msra.gmra.mxu0 %vm315_vm1, %v303_v19  ;;  %528 = vmatmul.msk.bf16.vlgmr.msra.gmra.mxu1 %vm315_vm1, %v305_v20 }
  0x4d   : > { %527 = vmatmul.msk.bf16.gmra.mxu0 %vm315_vm1, %v304_v27 }
  0xba   : > { %v338_v28 = vpop.f32.mrf.mxu0  ;;  %v348_v29 = vpop.f32.mrf.mxu1 }
  0xc2   : > { %v340_v30 = vpop.f32.mrf.mxu0  ;;  %v350_v31 = vpop.f32.mrf.mxu1 }
  0xc3   : > { %v353_v32 = vpack.c.bf16 %v340_v30, %v338_v28  ;;  %v401_v33 = vpack.c.bf16 %v350_v31, %v348_v29 }
  0xc5   : > { %365 = vmatpush.bf16.msrb.mxu1 %v353_v32  ;;  %409 = vmatpush.bf16.msra.mxu3 %v401_v33 }
  0xc8   : > { %534 = vmatmul.msk.bf16.vlgmr.msra.gmra.mxu3 %vm354_vm2, %v275_v34  ;;  %529 = vmatmul.msk.bf16.vlgmr.msrb.gmra.mxu1 %vm354_vm2, %v275_v34 }
  0xca   : > { %v343_v35 = vpop.f32.mrf.mxu0 }
  0xd2   : > { %v345_v36 = vpop.f32.mrf.mxu0 }
  0xd3   : > { %v379_v37 = vpack.c.bf16 %v345_v36, %v343_v35 }
  0xd5   : > { %387 = vmatpush.bf16.msra.mxu2 %v379_v37 }
  0xd8   : > { %530 = vmatmul.msk.bf16.vlgmr.msra.gmra.mxu2 %vm354_vm2, %v275_v34 }
 0x145   : > { %v367_v39 = vpop.f32.mrf.mxu1 }
 0x146   : > { %v373_v41 = vmul.f32 %v372_v38, %v367_v39 }
 0x148   : > { %v376_v42 = vadd.f32 %v375_v40, %v373_v41 }
 0x14a   : > { %378 = vst.msk [vmem:[%s273_s14] sm:$0x3f] %vm377_vm3, %v376_v42 }
 0x14b   : > { %v411_v44 = vpop.f32.mrf.mxu3 }
 0x14c   : > { %v417_v46 = vmul.f32 %v416_v43, %v411_v44 }
 0x14d   : > { %v369_v47 = vpop.f32.mrf.mxu1 }
 0x14e   : > { %v420_v48 = vadd.f32 %v419_v45, %v417_v46 }
 0x150   : > { %537 = vst.msk [vmem:[%s273_s14 + $0x10] sm:$0x3f] %vm377_vm3, %v420_v48 }
 0x153   : > { %v413_v49 = vpop.f32.mrf.mxu3 }
 0x15b   : > { %v389_v51 = vpop.f32.mrf.mxu2 }
 0x15c   : > { %v395_v53 = vmul.f32 %v394_v50, %v389_v51 }
 0x15e   : > { %v398_v54 = vadd.f32 %v397_v52, %v395_v53 }
 0x160   : > { %533 = vst.msk [vmem:[%s273_s14 + $0x8] sm:$0x3f] %vm377_vm3, %v398_v54 }
 0x163   : > { %v391_v55 = vpop.f32.mrf.mxu2 }
 0x164 PF: > { %p17_p8 = scmp.ge.s32.totalorder %s783_s23, 4   ;;  %s899_s18 = smov %s717_s19 }
 0x165   : > { %s900_s19 = smov %s721_s20  ;;  %s901_s20 = smov %s793_s26 }
 0x166   : > { %s902_s21 = smov %s783_s23  ;;  %19 = sbr.rel (!%p17_p8) target bundleno = 5 (0x5), region = 91 }
 0x16b   :  { %444 = vsyncpa [#allocation3], 1 }
 0x16c   :  { %446 = vsyncpa [#allocation3 + $0x1], 1 }
 0x16d   :  { %447 = vsyncpa [#allocation4], 1 }
 0x16e   :  { %449 = vsyncpa [#allocation4 + $0x1], 1 }
 0x16f   :  { %450 = vsyncpa [#allocation7], 1 }

</bundles_post_ra>
